<compile_context>
chip_gen: v7x
topology: tpu7x:2x2x1
jax: 0.10.0
libtpu: 0.0.40
codegen_flags: <defaults>
</compile_context>

<pallas_src>
import functools

import numpy as np
import jax
import jax.numpy as jnp
from jax import lax
from jax.experimental import pallas as pl
from jax.experimental.pallas import tpu as pltpu


def _pool_kernel(x_ref, o_ref, *, h, w, oh, ow, kh, kw, sh, sw, ph, pw,
                 op_pad, inv_divisor):
    # x_ref: (N*C, H*W) f32 in VMEM, o_ref: (N*C, OP_pad) f32 in VMEM.
    hw = h * w
    op = oh * ow

    # Flattened-coordinate iotas (int32 iota -> f32; all values are small exact
    # integers).  q indexes input pixels (rows of M), p indexes output pixels.
    q = lax.broadcasted_iota(jnp.int32, (hw, op_pad), 0).astype(jnp.float32)
    p = lax.broadcasted_iota(jnp.int32, (hw, op_pad), 1).astype(jnp.float32)

    # Decode q -> (hh, ww) and p -> (oi, oj).  The +0.5 centering keeps the true
    # quotient >= 0.5/w away from any integer, so f32 rounding (~1e-6) can never
    # change the floor -> exact integer division on the VPU.
    hh = jnp.floor((q + 0.5) * jnp.float32(1.0 / w))
    ww = q - hh * w
    oi = jnp.floor((p + 0.5) * jnp.float32(1.0 / ow))
    oj = p - oi * ow

    # Top-left corner of output window (oi, oj) in input coordinates (may be
    # negative: zero padding contributes nothing to the window sum).
    h0 = oi * sh - ph
    w0 = oj * sw - pw

    member = ((hh >= h0) & (hh < h0 + kh) &
              (ww >= w0) & (ww < w0 + kw) &
              (p < op))                      # zero the lane-padding columns

    # Fold the fixed 1/divisor scale into the membership matrix (f32, exactness
    # concerns are within the 1e-5 test tolerance; accumulation stays f32).
    m = jnp.where(member, jnp.float32(inv_divisor), jnp.float32(0.0))

    o_ref[...] = jnp.dot(x_ref[...], m,
                         preferred_element_type=jnp.float32).astype(o_ref.dtype)


@functools.partial(
    jax.jit,
    static_argnames=("kernel_size", "stride", "padding", "divisor_override"))
def avg_pool2d_divisor_override(x, kernel_size=(4, 8), stride=(2, 3),
                                padding=(2, 4), divisor_override=22):
    """x: (N, C, H, W) float32 -> (N, C, OH, OW) float32 (ceil_mode=False,
    count_include_pad=True, fixed divisor)."""
    n, c, h, w = x.shape
    kh, kw = kernel_size
    sh, sw = stride
    ph, pw = padding
    oh = (h + 2 * ph - kh) // sh + 1
    ow = (w + 2 * pw - kw) // sw + 1
    op = oh * ow
    op_pad = pl.cdiv(op, 128) * 128      # lane-dense output width (unmasked vst)

    rows = n * c
    hw = h * w
    x2d = x.reshape(rows, hw)

    kernel = functools.partial(
        _pool_kernel, h=h, w=w, oh=oh, ow=ow, kh=kh, kw=kw, sh=sh, sw=sw,
        ph=ph, pw=pw, op_pad=op_pad,
        inv_divisor=float(1.0 / divisor_override))

    out2d = pl.pallas_call(
        kernel,
        out_shape=jax.ShapeDtypeStruct((rows, op_pad), x.dtype),
        # No grid: whole arrays live in VMEM, single invocation, single buffer.
        in_specs=[pl.BlockSpec(memory_space=pltpu.MemorySpace.VMEM)],
        out_specs=pl.BlockSpec(memory_space=pltpu.MemorySpace.VMEM),
        cost_estimate=pl.CostEstimate(
            flops=2 * rows * hw * op_pad,
            transcendentals=0,
            bytes_accessed=4 * (rows * hw + rows * op_pad)),
    )(x2d)

    return out2d[:, :op].reshape(n, c, oh, ow)


if __name__ == "__main__":
    key = jax.random.PRNGKey(0)
    # Shape from the module annotation: [4, 4, 20, 20]
    x = jax.random.normal(key, (4, 4, 20, 20), dtype=jnp.float32)

    out = avg_pool2d_divisor_override(x, kernel_size=(4, 8), stride=(2, 3),
                                      padding=(2, 4), divisor_override=22)
    out = jax.block_until_ready(out)
    assert out.shape == (4, 4, 11, 7), out.shape

    # Pure-JAX reference: zero-pad, windowed sum, divide by the overridden divisor.
    xp = jnp.pad(x, ((0, 0), (0, 0), (2, 2), (4, 4)))
    ref = jax.lax.reduce_window(
        xp, jnp.float32(0.0), jax.lax.add,
        window_dimensions=(1, 1, 4, 8),
        window_strides=(1, 1, 2, 3),
        padding="VALID") / 22.0
    np.testing.assert_allclose(np.asarray(out), np.asarray(ref),
                               rtol=1e-5, atol=1e-5)

    print("KERNEL_OK")
</pallas_src>

<mosaic_0001>
module attributes {stable_mosaic.version = 11 : i64} {
  func.func @_pool_kernel(%arg0: memref<16x400xf32, #tpu.memory_space<vmem>>, %arg1: memref<16x128xf32, #tpu.memory_space<vmem>>) attributes {dimension_semantics = [], scalar_prefetch = 0 : i64, scratch_operands = 0 : i64, tpu.core_type = #tpu.core_type<tc>} {
    %0 = tpu.iota {dimensions = array<i32: 0>} : vector<400x128xi32>
    %1 = arith.sitofp %0 : vector<400x128xi32> to vector<400x128xf32>
    %2 = tpu.iota {dimensions = array<i32: 1>} : vector<400x128xi32>
    %3 = arith.sitofp %2 : vector<400x128xi32> to vector<400x128xf32>
    %cst = arith.constant 5.000000e-01 : f32
    %4 = vector.broadcast %cst : f32 to vector<400x128xf32>
    %5 = arith.addf %1, %4 : vector<400x128xf32>
    %cst_0 = arith.constant 5.000000e-02 : f32
    %6 = vector.broadcast %cst_0 : f32 to vector<400x128xf32>
    %7 = arith.mulf %5, %6 : vector<400x128xf32>
    %8 = math.floor %7 : vector<400x128xf32>
    %cst_1 = arith.constant 2.000000e+01 : f32
    %9 = vector.broadcast %cst_1 : f32 to vector<400x128xf32>
    %10 = arith.mulf %8, %9 : vector<400x128xf32>
    %11 = arith.subf %1, %10 : vector<400x128xf32>
    %cst_2 = arith.constant 5.000000e-01 : f32
    %12 = vector.broadcast %cst_2 : f32 to vector<400x128xf32>
    %13 = arith.addf %3, %12 : vector<400x128xf32>
    %cst_3 = arith.constant 0.142857149 : f32
    %14 = vector.broadcast %cst_3 : f32 to vector<400x128xf32>
    %15 = arith.mulf %13, %14 : vector<400x128xf32>
    %16 = math.floor %15 : vector<400x128xf32>
    %cst_4 = arith.constant 7.000000e+00 : f32
    %17 = vector.broadcast %cst_4 : f32 to vector<400x128xf32>
    %18 = arith.mulf %16, %17 : vector<400x128xf32>
    %19 = arith.subf %3, %18 : vector<400x128xf32>
    %cst_5 = arith.constant 2.000000e+00 : f32
    %20 = vector.broadcast %cst_5 : f32 to vector<400x128xf32>
    %21 = arith.mulf %16, %20 : vector<400x128xf32>
    %cst_6 = arith.constant 2.000000e+00 : f32
    %22 = vector.broadcast %cst_6 : f32 to vector<400x128xf32>
    %23 = arith.subf %21, %22 : vector<400x128xf32>
    %cst_7 = arith.constant 3.000000e+00 : f32
    %24 = vector.broadcast %cst_7 : f32 to vector<400x128xf32>
    %25 = arith.mulf %19, %24 : vector<400x128xf32>
    %cst_8 = arith.constant 4.000000e+00 : f32
    %26 = vector.broadcast %cst_8 : f32 to vector<400x128xf32>
    %27 = arith.subf %25, %26 : vector<400x128xf32>
    %28 = arith.cmpf oge, %8, %23 : vector<400x128xf32>
    %cst_9 = arith.constant 4.000000e+00 : f32
    %29 = vector.broadcast %cst_9 : f32 to vector<400x128xf32>
    %30 = arith.addf %23, %29 : vector<400x128xf32>
    %31 = arith.cmpf olt, %8, %30 : vector<400x128xf32>
    %32 = arith.andi %28, %31 : vector<400x128xi1>
    %33 = arith.cmpf oge, %11, %27 : vector<400x128xf32>
    %34 = arith.andi %32, %33 : vector<400x128xi1>
    %cst_10 = arith.constant 8.000000e+00 : f32
    %35 = vector.broadcast %cst_10 : f32 to vector<400x128xf32>
    %36 = arith.addf %27, %35 : vector<400x128xf32>
    %37 = arith.cmpf olt, %11, %36 : vector<400x128xf32>
    %38 = arith.andi %34, %37 : vector<400x128xi1>
    %cst_11 = arith.constant 7.700000e+01 : f32
    %39 = vector.broadcast %cst_11 : f32 to vector<400x128xf32>
    %40 = arith.cmpf olt, %3, %39 : vector<400x128xf32>
    %41 = arith.andi %38, %40 : vector<400x128xi1>
    %cst_12 = arith.constant 0.0454545468 : f32
    %cst_13 = arith.constant 0.000000e+00 : f32
    %42 = vector.broadcast %cst_12 : f32 to vector<400x128xf32>
    %43 = vector.broadcast %cst_13 : f32 to vector<400x128xf32>
    %44 = arith.select %41, %42, %43 : vector<400x128xi1>, vector<400x128xf32>
    %c0 = arith.constant 0 : index
    %c0_14 = arith.constant 0 : index
    %45 = vector.load %arg0[%c0, %c0_14] : memref<16x400xf32, #tpu.memory_space<vmem>>, vector<16x400xf32>
    %cst_15 = arith.constant dense<0.000000e+00> : vector<16x128xf32>
    %46 = tpu.matmul %45, %44, %cst_15 {dimension_numbers = #tpu.dot_dimension_numbers<[1], [0], [0], [1], [0, 0, 1, 1], [], []>} : vector<16x400xf32>, vector<400x128xf32>, vector<16x128xf32> -> vector<16x128xf32>
    %c0_16 = arith.constant 0 : index
    %c0_17 = arith.constant 0 : index
    %47 = vector.load %arg1[%c0_16, %c0_17] : memref<16x128xf32, #tpu.memory_space<vmem>>, vector<16x128xf32>
    tpu.vector_store %arg1[%c0_16, %c0_17], %46 {strides = array<i32>} : memref<16x128xf32, #tpu.memory_space<vmem>>, vector<16x128xf32>,
    return
  }
}

</mosaic_0001>

<bundles_post_ra>
// kernel: avg_pool2d_divisor_override.1
= control target key start
LH: loop header
LB: loop body
LE: loop exit
PB: predicated region body
PF: predicated region fallthrough
CT: control target
= control target key end

     0   :  { %v8_v0 = vlaneseq  ;;  %v1098_v1 = vmov 0.0|0.0   ;;  %v1099_v63 = vmov 0.0   ;;  %s1983_s0 = inlined_call_operand.vmem [shape: f32[16,400], index: 0, kind: input, shape index: {}]   ;;  %s1984_s1 = inlined_call_operand.vmem [shape: f32[16,128], index: 1, kind: output, shape index: {}]  }
   0x1   :  { %1069 = vmatprep.subr.bf16.mxu1 %v1098_v1 }
   0x2   :  { %v1111_v2 = vshrl.u32 %v8_v0, 7  ;;  %v110_v3 = vand.u32 127, %v8_v0 }
   0x4   :  { %v25_v4 = vadd.s32 128, %v1111_v2  ;;  %v26_v5 = vadd.s32 136, %v1111_v2  ;;  %v1115_v6 = vcvt.s32.f32 %v110_v3  ;;  %v41_v7 = vadd.s32 256, %v1111_v2 }
   0x5   :  { %v42_v8 = vadd.s32 264, %v1111_v2  ;;  %v1120_v9 = vadd.s32 8, %v1111_v2  ;;  %v59_v20 = vcvt.s32.f32 %v1111_v2  ;;  %v1133_v38 = vadd.s32 144, %v1111_v2 }
   0x6   :  { %v75_v10 = vcvt.s32.f32 %v25_v4  ;;  %v76_v11 = vcvt.s32.f32 %v26_v5  ;;  %v362_v12 = vadd.f32 0.5, %v1115_v6  ;;  %v91_v13 = vcvt.s32.f32 %v41_v7 }
   0x7   :  { %v92_v14 = vcvt.s32.f32 %v42_v8  ;;  %v60_v21 = vcvt.s32.f32 %v1120_v9  ;;  %v112_v31 = vadd.f32 0.5, %v59_v20  ;;  %v1143_v47 = vadd.s32 152, %v1111_v2 }
   0x8   :  { %v128_v15 = vadd.f32 0.5, %v75_v10  ;;  %v129_v16 = vadd.f32 0.5, %v76_v11  ;;  %v363_v17 = vmul.f32 0.14285715, %v362_v12  ;;  %v144_v18 = vadd.f32 0.5, %v91_v13 }
   0x9   :  { %v145_v19 = vadd.f32 0.5, %v92_v14  ;;  %v113_v32 = vadd.f32 0.5, %v60_v21  ;;  %v162_v44 = vmul.f32 0.05, %v112_v31  ;;  %v77_v49 = vcvt.s32.f32 %v1133_v38 }
   0xa   :  { %v178_v22 = vmul.f32 0.05, %v128_v15  ;;  %v179_v23 = vmul.f32 0.05, %v129_v16  ;;  %v364_v24 = vfloor.f32 %v363_v17  ;;  %v194_v25 = vmul.f32 0.05, %v144_v18 }
   0xb   :  { %v195_v26 = vmul.f32 0.05, %v145_v19  ;;  %v163_v46 = vmul.f32 0.05, %v113_v32  ;;  %v1153_v52 = vfloor.f32 %v162_v44  ;;  %vm723_vm12 = vcmp.lt.f32.partialorder %v1115_v6, 77.0 }
   0xc   :  { %v228_v27 = vfloor.f32 %v178_v22  ;;  %v229_v28 = vfloor.f32 %v179_v23  ;;  %v365_v29 = vmul.f32 7.0, %v364_v24  ;;  %v367_v30 = vmul.f32 2.0, %v364_v24 }
   0xd   :  { %v244_v37 = vfloor.f32 %v194_v25  ;;  %v245_v42 = vfloor.f32 %v195_v26  ;;  %v1157_v53 = vfloor.f32 %v163_v46  ;;  %v78_v56 = vcvt.s32.f32 %v1143_v47 }
   0xe   :  { %v278_v33 = vmul.f32 20.0, %v228_v27  ;;  %v279_v34 = vmul.f32 20.0, %v229_v28  ;;  %v366_v35 = vsub.f32 %v1115_v6, %v365_v29  ;;  %v1130_v36 = vadd.f32 -2.0, %v367_v30  ;;  %v831_v6 = vld [vmem:[%s1983_s0 + $0x38] sm:$0xff] }
   0xf   :  { %v294_v48 = vmul.f32 20.0, %v244_v37  ;;  %v295_v51 = vmul.f32 20.0, %v245_v42  ;;  %v130_v57 = vadd.f32 0.5, %v77_v49  ;;  %v1164_v58 = vadd.s32 272, %v1111_v2 }
  0x10   :  { %v328_v39 = vsub.f32 %v75_v10, %v278_v33  ;;  %v329_v40 = vsub.f32 %v76_v11, %v279_v34  ;;  %v369_v41 = vmul.f32 3.0, %v366_v35  ;;  %vm387_vm0 = vcmp.ge.f32.partialorder %v228_v27, %v1130_v36 }
  0x11   :  { %v1137_v43 = vadd.f32 4.0, %v1130_v36  ;;  %vm388_vm1 = vcmp.ge.f32.partialorder %v229_v28, %v1130_v36  ;;  %v344_v54 = vsub.f32 %v91_v13, %v294_v48  ;;  %v345_v55 = vsub.f32 %v92_v14, %v295_v51 }
  0x12   :  { %v1139_v45 = vadd.f32 -4.0, %v369_v41  ;;  %vm403_vm15 = vcmp.ge.f32.partialorder %v244_v37, %v1130_v36  ;;  %v262_v59 = vmul.f32 20.0, %v1153_v52  ;;  %v1170_v60 = vadd.s32 280, %v1111_v2 }
  0x13   :  { %vm438_vm2 = vcmp.lt.f32.partialorder %v228_v27, %v1137_v43  ;;  %vm439_vm3 = vcmp.lt.f32.partialorder %v229_v28, %v1137_v43  ;;  %v263_v61 = vmul.f32 20.0, %v1157_v53  ;;  %v131_v62 = vadd.f32 0.5, %v78_v56 }
  0x14   :  { %vm488_vm4 = vmand %vm387_vm0, %vm438_vm2  ;;  %vm538_vm5 = vcmp.ge.f32.partialorder %v328_v39, %v1139_v45  ;;  %vm539_vm6 = vcmp.ge.f32.partialorder %v329_v40, %v1139_v45  ;;  %v1151_v50 = vadd.f32 8.0, %v1139_v45  ;;  %vm454_vm0 = vcmp.lt.f32.partialorder %v244_v37, %v1137_v43 }
  0x15   :  { %vm489_vm7 = vmand %vm388_vm1, %vm439_vm3  ;;  %vm404_vm2 = vcmp.ge.f32.partialorder %v245_v42, %v1130_v36  ;;  %vm455_vm3 = vcmp.lt.f32.partialorder %v245_v42, %v1137_v43  ;;  %v180_v3 = vmul.f32 0.05, %v130_v57  ;;  %v93_v4 = vcvt.s32.f32 %v1164_v58 }
  0x16   :  { %vm588_vm8 = vmand %vm488_vm4, %vm538_vm5  ;;  %vm639_vm9 = vcmp.lt.f32.partialorder %v328_v39, %v1151_v50  ;;  %vm640_vm10 = vcmp.lt.f32.partialorder %v329_v40, %v1151_v50  ;;  %vm554_vm5 = vcmp.ge.f32.partialorder %v344_v54, %v1139_v45  ;;  %v181_v7 = vmul.f32 0.05, %v131_v62 }
  0x17   :  { %vm589_vm11 = vmand %vm489_vm7, %vm539_vm6  ;;  %vm555_vm7 = vcmp.ge.f32.partialorder %v345_v55, %v1139_v45  ;;  %v94_v8 = vcvt.s32.f32 %v1170_v60  ;;  %v312_v11 = vsub.f32 %v59_v20, %v262_v59  ;;  %v1200_v12 = vadd.s32 16, %v1111_v2 }
  0x18   :  { %vm689_vm13 = vmand %vm588_vm8, %vm639_vm9  ;;  %vm655_vm9 = vcmp.lt.f32.partialorder %v344_v54, %v1151_v50  ;;  %v230_v13 = vfloor.f32 %v180_v3  ;;  %v146_v14 = vadd.f32 0.5, %v93_v4  ;;  %v1205_v15 = vadd.s32 24, %v1111_v2 }
  0x19   :  { %vm690_vm14 = vmand %vm589_vm11, %vm640_vm10  ;;  %vm656_vm11 = vcmp.lt.f32.partialorder %v345_v55, %v1151_v50  ;;  %v313_v16 = vsub.f32 %v60_v21, %v263_v61  ;;  %v231_v17 = vfloor.f32 %v181_v7  ;;  %v147_v18 = vadd.f32 0.5, %v94_v8 }
  0x1a   :  { %vm740_vm1 = vmand %vm689_vm13, %vm723_vm12  ;;  %v61_v9 = vcvt.s32.f32 %v1200_v12  ;;  %v280_v20 = vmul.f32 20.0, %v230_v13  ;;  %v196_v21 = vmul.f32 0.05, %v146_v14  ;;  %v62_v22 = vcvt.s32.f32 %v1205_v15 }
  0x1b   :  { %vm741_vm4 = vmand %vm690_vm14, %vm723_vm12  ;;  %v790_v0 = vsel %vm740_vm1, 0.045454547, %v1099_v63  ;;  %vm422_vm1 = vcmp.lt.f32.partialorder %v1153_v52, %v1137_v43  ;;  %v281_v24 = vmul.f32 20.0, %v231_v17  ;;  %v197_v25 = vmul.f32 0.05, %v147_v18 }
  0x1c   :  { %v791_v5 = vsel %vm741_vm4, 0.045454547, %v1099_v63  ;;  %vm504_vm6 = vmand %vm403_vm15, %vm454_vm0  ;;  %vm371_vm0 = vcmp.ge.f32.partialorder %v1153_v52, %v1130_v36  ;;  %vm423_vm4 = vcmp.lt.f32.partialorder %v1157_v53, %v1137_v43  ;;  %v114_v27 = vadd.f32 0.5, %v61_v9 }
  0x1d   :  { %v1037_v10 = vpack.c.bf16 %v791_v5, %v790_v0  ;;  %vm505_vm8 = vmand %vm404_vm2, %vm455_vm3  ;;  %vm372_vm3 = vcmp.ge.f32.partialorder %v1157_v53, %v1130_v36  ;;  %v1239_v28 = vadd.s32 160, %v1111_v2  ;;  %v330_v29 = vsub.f32 %v77_v49, %v280_v20 }
  0x1e   :  { %vm604_vm10 = vmand %vm504_vm6, %vm554_vm5  ;;  %vm522_vm5 = vcmp.ge.f32.partialorder %v312_v11, %v1139_v45  ;;  %v246_v30 = vfloor.f32 %v196_v21  ;;  %v115_v31 = vadd.f32 0.5, %v62_v22  ;;  %v331_v32 = vsub.f32 %v78_v56, %v281_v24 }
  0x1f   :  { %1038 = vmatprep.subr.bf16.mxu0 %v1037_v10  ;;  %vm605_vm13 = vmand %vm505_vm8, %vm555_vm7  ;;  %vm523_vm8 = vcmp.ge.f32.partialorder %v313_v16, %v1139_v45  ;;  %v247_v33 = vfloor.f32 %v197_v25  ;;  %v1249_v34 = vadd.s32 168, %v1111_v2  ;;  %v164_v35 = vmul.f32 0.05, %v114_v27 }
  0x20   :  { %vm705_vm14 = vmand %vm604_vm10, %vm655_vm9  ;;  %vm623_vm10 = vcmp.lt.f32.partialorder %v312_v11, %v1151_v50  ;;  %v79_v37 = vcvt.s32.f32 %v1239_v28  ;;  %v296_v39 = vmul.f32 20.0, %v246_v30  ;;  %v165_v40 = vmul.f32 0.05, %v115_v31 }
  0x21   :  { %vm706_vm15 = vmand %vm605_vm13, %vm656_vm11  ;;  %vm624_vm13 = vcmp.lt.f32.partialorder %v313_v16, %v1151_v50  ;;  %v297_v42 = vmul.f32 20.0, %v247_v33  ;;  %v80_v44 = vcvt.s32.f32 %v1249_v34  ;;  %v214_v47 = vfloor.f32 %v164_v35 }
  0x22   :  { %vm756_vm2 = vmand %vm705_vm14, %vm723_vm12  ;;  %v1270_v48 = vadd.s32 288, %v1111_v2  ;;  %v346_v49 = vsub.f32 %v93_v4, %v296_v39  ;;  %v132_v51 = vadd.f32 0.5, %v79_v37  ;;  %v1277_v52 = vadd.s32 296, %v1111_v2 }
  0x23   :  { %vm757_vm6 = vmand %vm706_vm15, %vm723_vm12  ;;  %v806_v19 = vsel %vm756_vm2, 0.045454547, %v1099_v63  ;;  %vm440_vm2 = vcmp.lt.f32.partialorder %v230_v13, %v1137_v43  ;;  %v347_v53 = vsub.f32 %v94_v8, %v297_v42  ;;  %v215_v54 = vfloor.f32 %v165_v40 }
  0x24   :  { %v807_v23 = vsel %vm757_vm6, 0.045454547, %v1099_v63  ;;  %vm472_vm7 = vmand %vm371_vm0, %vm422_vm1  ;;  %vm389_vm1 = vcmp.ge.f32.partialorder %v230_v13, %v1130_v36  ;;  %v133_v55 = vadd.f32 0.5, %v80_v44  ;;  %v264_v56 = vmul.f32 20.0, %v214_v47 }
  0x25   :  { %v1070_v26 = vpack.c.bf16 %v807_v23, %v806_v19  ;;  %vm473_vm9 = vmand %vm372_vm3, %vm423_vm4  ;;  %vm390_vm4 = vcmp.ge.f32.partialorder %v231_v17, %v1130_v36  ;;  %v95_v57 = vcvt.s32.f32 %v1270_v48  ;;  %v182_v59 = vmul.f32 0.05, %v132_v51 }
  0x26   :  { %vm572_vm11 = vmand %vm472_vm7, %vm522_vm5  ;;  %vm441_vm5 = vcmp.lt.f32.partialorder %v231_v17, %v1137_v43  ;;  %vm540_vm7 = vcmp.ge.f32.partialorder %v330_v29, %v1139_v45  ;;  %v96_v60 = vcvt.s32.f32 %v1277_v52  ;;  %v265_v62 = vmul.f32 20.0, %v215_v54 }
  0x27   :  { %1071 = vmatpush1.bf16.msra.mxu1 %v1070_v26  ;;  %vm573_vm14 = vmand %vm473_vm9, %vm523_vm8  ;;  %vm541_vm9 = vcmp.ge.f32.partialorder %v331_v32, %v1139_v45  ;;  %v183_v0 = vmul.f32 0.05, %v133_v55  ;;  %v314_v4 = vsub.f32 %v61_v9, %v264_v56  ;;  %v148_v5 = vadd.f32 0.5, %v95_v57 }
  0x28   :  { %vm673_vm15 = vmand %vm572_vm11, %vm623_vm10  ;;  %1072 = vmatprep.subr.bf16.mxu1 %v1098_v1  ;;  %vm641_vm11 = vcmp.lt.f32.partialorder %v330_v29, %v1151_v50  ;;  %v232_v7 = vfloor.f32 %v182_v59  ;;  %v149_v8 = vadd.f32 0.5, %v96_v60  ;;  %v1308_v10 = vadd.s32 32, %v1111_v2 }
  0x29   :  { %vm674_vm0 = vmand %vm573_vm14, %vm624_vm13  ;;  %vm642_vm14 = vcmp.lt.f32.partialorder %v331_v32, %v1151_v50  ;;  %v315_v11 = vsub.f32 %v62_v22, %v265_v62  ;;  %v233_v13 = vfloor.f32 %v183_v0  ;;  %v1313_v12 = vadd.s32 40, %v1111_v2 }
  0x2a   :  { %vm724_vm3 = vmand %vm673_vm15, %vm723_vm12  ;;  %v198_v14 = vmul.f32 0.05, %v148_v5  ;;  %v282_v16 = vmul.f32 20.0, %v232_v7  ;;  %v199_v17 = vmul.f32 0.05, %v149_v8  ;;  %v63_v18 = vcvt.s32.f32 %v1308_v10 }
  0x2b   :  { %vm725_vm6 = vmand %vm674_vm0, %vm723_vm12  ;;  %v774_v38 = vsel %vm724_vm3, 0.045454547, %v1099_v63  ;;  %vm456_vm3 = vcmp.lt.f32.partialorder %v246_v30, %v1137_v43  ;;  %v283_v19 = vmul.f32 20.0, %v233_v13  ;;  %v64_v20 = vcvt.s32.f32 %v1313_v12 }
  0x2c   :  { %v775_v41 = vsel %vm725_vm6, 0.045454547, %v1099_v63  ;;  %vm490_vm8 = vmand %vm389_vm1, %vm440_vm2  ;;  %vm405_vm2 = vcmp.ge.f32.partialorder %v246_v30, %v1130_v36  ;;  %vm457_vm6 = vcmp.lt.f32.partialorder %v247_v33, %v1137_v43  ;;  %v248_v22 = vfloor.f32 %v198_v14 }
  0x2d   :  { %v1039_v46 = vpack.c.bf16 %v775_v41, %v774_v38  ;;  %vm491_vm10 = vmand %vm390_vm4, %vm441_vm5  ;;  %vm406_vm5 = vcmp.ge.f32.partialorder %v247_v33, %v1130_v36  ;;  %v1336_v23 = vadd.s32 176, %v1111_v2  ;;  %v332_v24 = vsub.f32 %v79_v37, %v282_v16 }
  0x2e   :  { %vm590_vm13 = vmand %vm490_vm8, %vm540_vm7  ;;  %vm556_vm8 = vcmp.ge.f32.partialorder %v346_v49, %v1139_v45  ;;  %v249_v25 = vfloor.f32 %v199_v17  ;;  %v116_v26 = vadd.f32 0.5, %v63_v18  ;;  %v333_v27 = vsub.f32 %v80_v44, %v283_v19 }
  0x2f   :  { %1040 = vmatpush3.bf16.msra.mxu0 %v1039_v46  ;;  %vm591_vm15 = vmand %vm491_vm10, %vm541_vm9  ;;  %vm557_vm10 = vcmp.ge.f32.partialorder %v347_v53, %v1139_v45  ;;  %v117_v29 = vadd.f32 0.5, %v64_v20  ;;  %v1348_v30 = vadd.s32 184, %v1111_v2  ;;  %v298_v28 = vmul.f32 20.0, %v248_v22 }
  0x30   :  { %vm691_vm0 = vmand %vm590_vm13, %vm641_vm11  ;;  %vm657_vm13 = vcmp.lt.f32.partialorder %v346_v49, %v1151_v50  ;;  %v81_v31 = vcvt.s32.f32 %v1336_v23  ;;  %v299_v33 = vmul.f32 20.0, %v249_v25  ;;  %v166_v34 = vmul.f32 0.05, %v116_v26  ;;  %v825_v26 = vld [vmem:[%s1983_s0 + $0x8] sm:$0xff] }
  0x31   :  { %vm692_vm1 = vmand %vm591_vm15, %vm642_vm14  ;;  %vm658_vm15 = vcmp.lt.f32.partialorder %v347_v53, %v1151_v50  ;;  %v167_v37 = vmul.f32 0.05, %v117_v29  ;;  %v82_v38 = vcvt.s32.f32 %v1348_v30  ;;  %v348_v40 = vsub.f32 %v95_v57, %v298_v28  ;;  %903 = vmatprep.mubr.f32.mxu0 %v825_v26 }
  0x32   :  { %vm742_vm4 = vmand %vm691_vm0, %vm723_vm12  ;;  %v134_v41 = vadd.f32 0.5, %v81_v31  ;;  %v349_v42 = vsub.f32 %v96_v60, %v299_v33  ;;  %v216_v44 = vfloor.f32 %v166_v34  ;;  %v1375_v46 = vadd.s32 304, %v1111_v2 }
  0x33   :  { %vm743_vm7 = vmand %vm692_vm1, %vm723_vm12  ;;  %v792_v58 = vsel %vm742_vm4, 0.045454547, %v1099_v63  ;;  %vm424_vm4 = vcmp.lt.f32.partialorder %v214_v47, %v1137_v43  ;;  %v135_v49 = vadd.f32 0.5, %v82_v38  ;;  %v1380_v48 = vadd.s32 312, %v1111_v2 }
  0x34   :  { %v793_v61 = vsel %vm743_vm7, 0.045454547, %v1099_v63  ;;  %vm506_vm9 = vmand %vm405_vm2, %vm456_vm3  ;;  %vm373_vm3 = vcmp.ge.f32.partialorder %v214_v47, %v1130_v36  ;;  %vm425_vm7 = vcmp.lt.f32.partialorder %v215_v54, %v1137_v43  ;;  %v217_v47 = vfloor.f32 %v167_v37 }
  0x35   :  { %v1041_v3 = vpack.c.bf16 %v793_v61, %v792_v58  ;;  %vm507_vm11 = vmand %vm406_vm5, %vm457_vm6  ;;  %vm374_vm6 = vcmp.ge.f32.partialorder %v215_v54, %v1130_v36  ;;  %v184_v51 = vmul.f32 0.05, %v134_v41  ;;  %v266_v53 = vmul.f32 20.0, %v216_v44 }
  0x36   :  { %vm606_vm14 = vmand %vm506_vm9, %vm556_vm8  ;;  %vm524_vm8 = vcmp.ge.f32.partialorder %v314_v4, %v1139_v45  ;;  %v97_v54 = vcvt.s32.f32 %v1375_v46  ;;  %v267_v56 = vmul.f32 20.0, %v217_v47  ;;  %v185_v57 = vmul.f32 0.05, %v135_v49 }
  0x37   :  { %1042 = vmatprep.subr.bf16.mxu0 %v1041_v3  ;;  %vm607_vm0 = vmand %vm507_vm11, %vm557_vm10  ;;  %vm525_vm11 = vcmp.ge.f32.partialorder %v315_v11, %v1139_v45  ;;  %v98_v58 = vcvt.s32.f32 %v1380_v48  ;;  %v1402_v60 = vfloor.f32 %v184_v51  ;;  %v1405_v61 = vadd.s32 48, %v1111_v2 }
  0x38   :  { %vm707_vm1 = vmand %vm606_vm14, %vm657_vm13  ;;  %vm625_vm14 = vcmp.lt.f32.partialorder %v314_v4, %v1151_v50  ;;  %v316_v62 = vsub.f32 %v63_v18, %v266_v53  ;;  %v150_v0 = vadd.f32 0.5, %v97_v54  ;;  %v1414_v3 = vadd.s32 56, %v1111_v2 }
  0x39   :  { %vm708_vm2 = vmand %vm607_vm0, %vm658_vm15  ;;  %vm626_vm0 = vcmp.lt.f32.partialorder %v315_v11, %v1151_v50  ;;  %v317_v4 = vsub.f32 %v64_v20, %v267_v56  ;;  %v235_v5 = vfloor.f32 %v185_v57  ;;  %v284_v8 = vmul.f32 20.0, %v1402_v60 }
  0x3a   :  { %vm758_vm5 = vmand %vm707_vm1, %vm723_vm12  ;;  %v65_v10 = vcvt.s32.f32 %v1405_v61  ;;  %v66_v12 = vcvt.s32.f32 %v1414_v3  ;;  %v1523_v61 = vadd.s32 72, %v1111_v2 }
  0x3b   :  { %vm759_vm9 = vmand %vm708_vm2, %vm723_vm12  ;;  %v808_v15 = vsel %vm758_vm5, 0.045454547, %v1099_v63  ;;  %vm442_vm5 = vcmp.lt.f32.partialorder %v232_v7, %v1137_v43  ;;  %v334_v19 = vsub.f32 %v81_v31, %v284_v8 }
  0x3c   :  { %v809_v9 = vsel %vm759_vm9, 0.045454547, %v1099_v63  ;;  %vm474_vm10 = vmand %vm373_vm3, %vm424_vm4  ;;  %vm391_vm4 = vcmp.ge.f32.partialorder %v232_v7, %v1130_v36  ;;  %v151_v7 = vadd.f32 0.5, %v98_v58  ;;  %v118_v18 = vadd.f32 0.5, %v65_v10 }
  0x3d   :  { %v1073_v21 = vpack.c.bf16 %v809_v9, %v808_v15  ;;  %vm475_vm13 = vmand %vm374_vm6, %vm425_vm7  ;;  %vm392_vm7 = vcmp.ge.f32.partialorder %v233_v13, %v1130_v36  ;;  %v285_v15 = vmul.f32 20.0, %v235_v5  ;;  %v1442_v9 = vadd.s32 192, %v1111_v2 }
  0x3e   :  { %vm574_vm15 = vmand %vm474_vm10, %vm524_vm8  ;;  %vm443_vm8 = vcmp.lt.f32.partialorder %v233_v13, %v1137_v43  ;;  %vm542_vm10 = vcmp.ge.f32.partialorder %v332_v24, %v1139_v45  ;;  %v200_v13 = vmul.f32 0.05, %v150_v0  ;;  %v201_v16 = vmul.f32 0.05, %v151_v7 }
  0x3f   :  { %1074 = vmatpush1.bf16.msra.mxu1 %v1073_v21  ;;  %vm575_vm1 = vmand %vm475_vm13, %vm525_vm11  ;;  %vm543_vm13 = vcmp.ge.f32.partialorder %v333_v27, %v1139_v45  ;;  %v119_v21 = vadd.f32 0.5, %v66_v12  ;;  %v168_v23 = vmul.f32 0.05, %v118_v18  ;;  %v1555_v18 = vadd.s32 216, %v1111_v2 }
  0x40   :  { %vm675_vm2 = vmand %vm574_vm15, %vm625_vm14  ;;  %1075 = vmatprep.subr.bf16.mxu1 %v1098_v1  ;;  %vm643_vm15 = vcmp.lt.f32.partialorder %v332_v24, %v1151_v50  ;;  %v250_v20 = vfloor.f32 %v200_v13  ;;  %v251_v24 = vfloor.f32 %v201_v16  ;;  %v68_v13 = vcvt.s32.f32 %v1523_v61 }
  0x41   :  { %vm676_vm3 = vmand %vm575_vm1, %vm626_vm0  ;;  %vm644_vm1 = vcmp.lt.f32.partialorder %v333_v27, %v1151_v50  ;;  %v83_v27 = vcvt.s32.f32 %v1442_v9  ;;  %v169_v28 = vmul.f32 0.05, %v119_v21  ;;  %v86_v26 = vcvt.s32.f32 %v1555_v18 }
  0x42   :  { %vm726_vm6 = vmand %vm675_vm2, %vm723_vm12  ;;  %v300_v30 = vmul.f32 20.0, %v250_v20 }
  0x43   :  { %vm727_vm9 = vmand %vm676_vm3, %vm723_vm12  ;;  %v776_v32 = vsel %vm726_vm6, 0.045454547, %v1099_v63  ;;  %vm458_vm6 = vcmp.lt.f32.partialorder %v248_v22, %v1137_v43  ;;  %v136_v37 = vadd.f32 0.5, %v83_v27 }
  0x44   :  { %v777_v35 = vsel %vm727_vm9, 0.045454547, %v1099_v63  ;;  %vm492_vm11 = vmand %vm391_vm4, %vm442_vm5  ;;  %vm407_vm5 = vcmp.ge.f32.partialorder %v248_v22, %v1130_v36  ;;  %vm459_vm9 = vcmp.lt.f32.partialorder %v249_v25, %v1137_v43  ;;  %v335_v22 = vsub.f32 %v82_v38, %v285_v15 }
  0x45   :  { %v1043_v39 = vpack.c.bf16 %v777_v35, %v776_v32  ;;  %vm493_vm14 = vmand %vm392_vm7, %vm443_vm8  ;;  %vm408_vm8 = vcmp.ge.f32.partialorder %v249_v25, %v1130_v36  ;;  %v1452_v25 = vadd.s32 200, %v1111_v2  ;;  %v301_v32 = vmul.f32 20.0, %v251_v24 }
  0x46   :  { %vm592_vm0 = vmand %vm492_vm11, %vm542_vm10  ;;  %vm558_vm10 = vcmp.ge.f32.partialorder %v348_v40, %v1139_v45  ;;  %v218_v35 = vfloor.f32 %v168_v23  ;;  %v350_v38 = vsub.f32 %v97_v54, %v300_v30  ;;  %v1548_v15 = vadd.s32 208, %v1111_v2 }
  0x47   :  { %1044 = vmatpush3.bf16.msra.mxu0 %v1043_v39  ;;  %vm593_vm2 = vmand %vm493_vm14, %vm543_vm13  ;;  %vm559_vm13 = vcmp.ge.f32.partialorder %v349_v42, %v1139_v45  ;;  %v84_v33 = vcvt.s32.f32 %v1452_v25  ;;  %v219_v39 = vfloor.f32 %v169_v28  ;;  %v351_v41 = vsub.f32 %v98_v58, %v301_v32 }
  0x48   :  { %vm693_vm3 = vmand %vm592_vm0, %vm643_vm15  ;;  %vm659_vm0 = vcmp.lt.f32.partialorder %v348_v40, %v1151_v50  ;;  %v1484_v40 = vadd.s32 320, %v1111_v2  ;;  %v268_v46 = vmul.f32 20.0, %v218_v35  ;;  %v85_v21 = vcvt.s32.f32 %v1548_v15 }
  0x49   :  { %vm694_vm4 = vmand %vm593_vm2, %vm644_vm1  ;;  %vm660_vm2 = vcmp.lt.f32.partialorder %v349_v42, %v1151_v50  ;;  %v137_v42 = vadd.f32 0.5, %v84_v33  ;;  %v269_v48 = vmul.f32 20.0, %v219_v39 }
  0x4a   :  { %vm744_vm7 = vmand %vm693_vm3, %vm723_vm12  ;;  %v99_v51 = vcvt.s32.f32 %v1484_v40  ;;  %v318_v56 = vsub.f32 %v65_v10, %v268_v46  ;;  %v138_v28 = vadd.f32 0.5, %v85_v21 }
  0x4b   :  { %vm745_vm11 = vmand %vm694_vm4, %vm723_vm12  ;;  %v794_v52 = vsel %vm744_vm7, 0.045454547, %v1099_v63  ;;  %vm426_vm7 = vcmp.lt.f32.partialorder %v216_v44, %v1137_v43  ;;  %v187_v53 = vmul.f32 0.05, %v137_v42  ;;  %v319_v58 = vsub.f32 %v66_v12, %v269_v48 }
  0x4c   :  { %v795_v55 = vsel %vm745_vm11, 0.045454547, %v1099_v63  ;;  %vm508_vm14 = vmand %vm407_vm5, %vm458_vm6  ;;  %vm375_vm6 = vcmp.ge.f32.partialorder %v216_v44, %v1130_v36  ;;  %v1491_v44 = vadd.s32 328, %v1111_v2 }
  0x4d   :  { %v1045_v59 = vpack.c.bf16 %v795_v55, %v794_v52  ;;  %vm509_vm15 = vmand %vm408_vm8, %vm459_vm9  ;;  %vm376_vm9 = vcmp.ge.f32.partialorder %v217_v47, %v1130_v36 }
  0x4e   :  { %vm608_vm1 = vmand %vm508_vm14, %vm558_vm10  ;;  %vm427_vm10 = vcmp.lt.f32.partialorder %v217_v47, %v1137_v43  ;;  %v186_v47 = vmul.f32 0.05, %v136_v37  ;;  %v100_v54 = vcvt.s32.f32 %v1491_v44 }
  0x4f   :  { %1046 = vmatprep.subr.bf16.mxu0 %v1045_v59  ;;  %vm609_vm3 = vmand %vm509_vm15, %vm559_vm13  ;;  %vm526_vm13 = vcmp.ge.f32.partialorder %v316_v62, %v1139_v45  ;;  %vm527_vm15 = vcmp.ge.f32.partialorder %v317_v4, %v1139_v45  ;;  %v152_v59 = vadd.f32 0.5, %v99_v51 }
  0x50   :  { %vm709_vm4 = vmand %vm608_vm1, %vm659_vm0  ;;  %vm627_vm1 = vcmp.lt.f32.partialorder %v316_v62, %v1151_v50  ;;  %v236_v57 = vfloor.f32 %v186_v47  ;;  %v237_v62 = vfloor.f32 %v187_v53  ;;  %v153_v0 = vadd.f32 0.5, %v100_v54 }
  0x51   :  { %vm710_vm5 = vmand %vm609_vm3, %vm660_vm2  ;;  %vm628_vm3 = vcmp.lt.f32.partialorder %v317_v4, %v1151_v50 }
  0x52   :  { %vm760_vm8 = vmand %vm709_vm4, %vm723_vm12  ;;  %v286_v3 = vmul.f32 20.0, %v236_v57  ;;  %v287_v10 = vmul.f32 20.0, %v237_v62 }
  0x53   :  { %vm761_vm11 = vmand %vm710_vm5, %vm723_vm12  ;;  %v810_v11 = vsel %vm760_vm8, 0.045454547, %v1099_v63  ;;  %vm444_vm8 = vcmp.lt.f32.partialorder %v1402_v60, %v1137_v43 }
  0x54   :  { %v811_v14 = vsel %vm761_vm11, 0.045454547, %v1099_v63  ;;  %vm476_vm14 = vmand %vm375_vm6, %vm426_vm7  ;;  %vm393_vm7 = vcmp.ge.f32.partialorder %v1402_v60, %v1130_v36  ;;  %vm445_vm11 = vcmp.lt.f32.partialorder %v235_v5, %v1137_v43  ;;  %v1518_v60 = vadd.s32 64, %v1111_v2 }
  0x55   :  { %v1076_v17 = vpack.c.bf16 %v811_v14, %v810_v11  ;;  %vm477_vm0 = vmand %vm376_vm9, %vm427_vm10  ;;  %vm394_vm10 = vcmp.ge.f32.partialorder %v235_v5, %v1130_v36  ;;  %v202_v5 = vmul.f32 0.05, %v152_v59  ;;  %v203_v11 = vmul.f32 0.05, %v153_v0 }
  0x56   :  { %vm576_vm2 = vmand %vm476_vm14, %vm526_vm13  ;;  %vm544_vm14 = vcmp.ge.f32.partialorder %v334_v19, %v1139_v45  ;;  %v67_v7 = vcvt.s32.f32 %v1518_v60  ;;  %v336_v14 = vsub.f32 %v83_v27, %v286_v3  ;;  %v337_v9 = vsub.f32 %v84_v33, %v287_v10 }
  0x57   :  { %1077 = vmatpush1.bf16.msra.mxu1 %v1076_v17  ;;  %vm577_vm4 = vmand %vm477_vm0, %vm527_vm15  ;;  %vm545_vm0 = vcmp.ge.f32.partialorder %v335_v22, %v1139_v45  ;;  %v252_v16 = vfloor.f32 %v202_v5 }
  0x58   :  { %vm677_vm5 = vmand %vm576_vm2, %vm627_vm1  ;;  %1078 = vmatprep.subr.bf16.mxu1 %v1098_v1  ;;  %vm645_vm2 = vcmp.lt.f32.partialorder %v334_v19, %v1151_v50  ;;  %v120_v17 = vadd.f32 0.5, %v67_v7  ;;  %v253_v19 = vfloor.f32 %v203_v11 }
  0x59   :  { %vm678_vm6 = vmand %vm577_vm4, %vm628_vm3  ;;  %vm646_vm4 = vcmp.lt.f32.partialorder %v335_v22, %v1151_v50 }
  0x5a   :  { %vm728_vm9 = vmand %vm677_vm5, %vm723_vm12  ;;  %v170_v25 = vmul.f32 0.05, %v120_v17  ;;  %v303_v27 = vmul.f32 20.0, %v253_v19 }
  0x5b   :  { %vm729_vm13 = vmand %vm678_vm6, %vm723_vm12  ;;  %v778_v29 = vsel %vm728_vm9, 0.045454547, %v1099_v63  ;;  %vm460_vm9 = vcmp.lt.f32.partialorder %v250_v20, %v1137_v43 }
  0x5c   :  { %v779_v31 = vsel %vm729_vm13, 0.045454547, %v1099_v63  ;;  %vm494_vm15 = vmand %vm393_vm7, %vm444_vm8  ;;  %vm409_vm8 = vcmp.ge.f32.partialorder %v250_v20, %v1130_v36  ;;  %vm461_vm13 = vcmp.lt.f32.partialorder %v251_v24, %v1137_v43  ;;  %v121_v20 = vadd.f32 0.5, %v68_v13 }
  0x5d   :  { %v1047_v34 = vpack.c.bf16 %v779_v31, %v778_v29  ;;  %vm495_vm1 = vmand %vm394_vm10, %vm445_vm11  ;;  %vm410_vm11 = vcmp.ge.f32.partialorder %v251_v24, %v1130_v36  ;;  %v302_v24 = vmul.f32 20.0, %v252_v16  ;;  %v1585_v31 = vadd.s32 336, %v1111_v2 }
  0x5e   :  { %vm594_vm3 = vmand %vm494_vm15, %vm544_vm14  ;;  %vm560_vm15 = vcmp.ge.f32.partialorder %v350_v38, %v1139_v45  ;;  %v171_v29 = vmul.f32 0.05, %v121_v20  ;;  %v220_v33 = vfloor.f32 %v170_v25 }
  0x5f   :  { %1048 = vmatpush3.bf16.msra.mxu0 %v1047_v34  ;;  %vm595_vm5 = vmand %vm495_vm1, %vm545_vm0  ;;  %vm561_vm1 = vcmp.ge.f32.partialorder %v351_v41, %v1139_v45  ;;  %v352_v32 = vsub.f32 %v99_v51, %v302_v24  ;;  %v139_v34 = vadd.f32 0.5, %v86_v26  ;;  %v101_v40 = vcvt.s32.f32 %v1585_v31 }
  0x60   :  { %vm695_vm6 = vmand %vm594_vm3, %vm645_vm2  ;;  %vm661_vm3 = vcmp.lt.f32.partialorder %v350_v38, %v1151_v50  ;;  %v221_v37 = vfloor.f32 %v171_v29  ;;  %v1594_v38 = vadd.s32 344, %v1111_v2  ;;  %v270_v42 = vmul.f32 20.0, %v220_v33 }
  0x61   :  { %vm696_vm7 = vmand %vm595_vm5, %vm646_vm4  ;;  %vm662_vm5 = vcmp.lt.f32.partialorder %v351_v41, %v1151_v50  ;;  %v189_v44 = vmul.f32 0.05, %v139_v34 }
  0x62   :  { %vm746_vm10 = vmand %vm695_vm6, %vm723_vm12  ;;  %v271_v47 = vmul.f32 20.0, %v221_v37  ;;  %v320_v53 = vsub.f32 %v67_v7, %v270_v42 }
  0x63   :  { %vm747_vm14 = vmand %vm696_vm7, %vm723_vm12  ;;  %v796_v49 = vsel %vm746_vm10, 0.045454547, %v1099_v63  ;;  %vm428_vm10 = vcmp.lt.f32.partialorder %v218_v35, %v1137_v43 }
  0x64   :  { %v797_v52 = vsel %vm747_vm14, 0.045454547, %v1099_v63  ;;  %vm510_vm0 = vmand %vm409_vm8, %vm460_vm9  ;;  %vm377_vm9 = vcmp.ge.f32.partialorder %v218_v35, %v1130_v36  ;;  %vm429_vm14 = vcmp.lt.f32.partialorder %v219_v39, %v1137_v43  ;;  %v353_v35 = vsub.f32 %v100_v54, %v303_v27 }
  0x65   :  { %v1049_v55 = vpack.c.bf16 %v797_v52, %v796_v49  ;;  %vm511_vm2 = vmand %vm410_vm11, %vm461_vm13  ;;  %vm378_vm13 = vcmp.ge.f32.partialorder %v219_v39, %v1130_v36  ;;  %v188_v39 = vmul.f32 0.05, %v138_v28  ;;  %v102_v49 = vcvt.s32.f32 %v1594_v38 }
  0x66   :  { %vm610_vm4 = vmand %vm510_vm0, %vm560_vm15  ;;  %vm528_vm15 = vcmp.ge.f32.partialorder %v318_v56, %v1139_v45  ;;  %v154_v52 = vadd.f32 0.5, %v101_v40  ;;  %v239_v54 = vfloor.f32 %v189_v44  ;;  %v827_v44 = vld [vmem:[%s1983_s0 + $0x18] sm:$0xff] }
  0x67   :  { %1050 = vmatprep.subr.bf16.mxu0 %v1049_v55  ;;  %vm611_vm6 = vmand %vm511_vm2, %vm561_vm1  ;;  %vm529_vm1 = vcmp.ge.f32.partialorder %v319_v58, %v1139_v45  ;;  %v238_v51 = vfloor.f32 %v188_v39  ;;  %v1619_v55 = vadd.s32 80, %v1111_v2 }
  0x68   :  { %vm711_vm7 = vmand %vm610_vm4, %vm661_vm3  ;;  %vm629_vm4 = vcmp.lt.f32.partialorder %v318_v56, %v1151_v50  ;;  %v321_v56 = vsub.f32 %v68_v13, %v271_v47  ;;  %v204_v60 = vmul.f32 0.05, %v154_v52  ;;  %v289_v0 = vmul.f32 20.0, %v239_v54 }
  0x69   :  { %vm712_vm8 = vmand %vm611_vm6, %vm662_vm5  ;;  %vm630_vm6 = vcmp.lt.f32.partialorder %v319_v58, %v1151_v50  ;;  %v1626_v58 = vadd.s32 88, %v1111_v2  ;;  %v288_v59 = vmul.f32 20.0, %v238_v51  ;;  %v69_v61 = vcvt.s32.f32 %v1619_v55 }
  0x6a   :  { %vm762_vm11 = vmand %vm711_vm7, %vm723_vm12  ;;  %v254_v10 = vfloor.f32 %v204_v60  ;;  %v339_v11 = vsub.f32 %v86_v26, %v289_v0  ;;  %v1723_v47 = vadd.s32 96, %v1111_v2 }
  0x6b   :  { %vm763_vm0 = vmand %vm712_vm8, %vm723_vm12  ;;  %v812_v4 = vsel %vm762_vm11, 0.045454547, %v1099_v63  ;;  %vm446_vm11 = vcmp.lt.f32.partialorder %v236_v57, %v1137_v43  ;;  %v70_v5 = vcvt.s32.f32 %v1626_v58  ;;  %v122_v13 = vadd.f32 0.5, %v69_v61 }
  0x6c   :  { %v813_v8 = vsel %vm763_vm0, 0.045454547, %v1099_v63  ;;  %vm478_vm2 = vmand %vm377_vm9, %vm428_vm10  ;;  %vm395_vm10 = vcmp.ge.f32.partialorder %v236_v57, %v1130_v36  ;;  %vm546_vm0 = vcmp.ge.f32.partialorder %v336_v14, %v1139_v45  ;;  %v155_v57 = vadd.f32 0.5, %v102_v49 }
  0x6d   :  { %v1079_v12 = vpack.c.bf16 %v813_v8, %v812_v4  ;;  %vm479_vm3 = vmand %vm378_vm13, %vm429_vm14  ;;  %vm396_vm14 = vcmp.ge.f32.partialorder %v237_v62, %v1130_v36  ;;  %v338_v8 = vsub.f32 %v85_v21, %v288_v59  ;;  %v123_v15 = vadd.f32 0.5, %v70_v5 }
  0x6e   :  { %vm578_vm5 = vmand %vm478_vm2, %vm528_vm15  ;;  %vm447_vm15 = vcmp.lt.f32.partialorder %v237_v62, %v1137_v43  ;;  %v205_v4 = vmul.f32 0.05, %v155_v57  ;;  %v304_v17 = vmul.f32 20.0, %v254_v10 }
  0x6f   :  { %1080 = vmatpush1.bf16.msra.mxu1 %v1079_v12  ;;  %vm579_vm7 = vmand %vm479_vm3, %vm529_vm1  ;;  %vm547_vm3 = vcmp.ge.f32.partialorder %v337_v9, %v1139_v45  ;;  %v1653_v12 = vadd.s32 224, %v1111_v2 }
  0x70   :  { %vm679_vm8 = vmand %vm578_vm5, %vm629_vm4  ;;  %1081 = vmatprep.subr.bf16.mxu1 %v1098_v1  ;;  %vm647_vm5 = vcmp.lt.f32.partialorder %v336_v14, %v1151_v50  ;;  %v255_v14 = vfloor.f32 %v205_v4  ;;  %v354_v26 = vsub.f32 %v101_v40, %v304_v17  ;;  %v1757_v4 = vadd.s32 248, %v1111_v2 }
  0x71   :  { %vm680_vm9 = vmand %vm579_vm7, %vm630_vm6  ;;  %vm648_vm7 = vcmp.lt.f32.partialorder %v337_v9, %v1151_v50  ;;  %v172_v9 = vmul.f32 0.05, %v122_v13 }
  0x72   :  { %vm730_vm13 = vmand %vm679_vm8, %vm723_vm12  ;;  %v305_v21 = vmul.f32 20.0, %v255_v14 }
  0x73   :  { %vm731_vm1 = vmand %vm680_vm9, %vm723_vm12  ;;  %v780_v22 = vsel %vm730_vm13, 0.045454547, %v1099_v63  ;;  %vm462_vm13 = vcmp.lt.f32.partialorder %v252_v16, %v1137_v43  ;;  %v222_v27 = vfloor.f32 %v172_v9 }
  0x74   :  { %v781_v23 = vsel %vm731_vm1, 0.045454547, %v1099_v63  ;;  %vm496_vm2 = vmand %vm395_vm10, %vm446_vm11  ;;  %vm411_vm11 = vcmp.ge.f32.partialorder %v252_v16, %v1130_v36  ;;  %v1659_v16 = vadd.s32 232, %v1111_v2  ;;  %v355_v28 = vsub.f32 %v102_v49, %v305_v21 }
  0x75   :  { %v1051_v30 = vpack.c.bf16 %v781_v23, %v780_v22  ;;  %vm497_vm4 = vmand %vm396_vm14, %vm447_vm15  ;;  %vm412_vm15 = vcmp.ge.f32.partialorder %v253_v19, %v1130_v36  ;;  %v173_v22 = vmul.f32 0.05, %v123_v15  ;;  %v1684_v23 = vadd.s32 352, %v1111_v2 }
  0x76   :  { %vm596_vm6 = vmand %vm496_vm2, %vm546_vm0  ;;  %vm463_vm0 = vcmp.lt.f32.partialorder %v253_v19, %v1137_v43  ;;  %vm562_vm2 = vcmp.ge.f32.partialorder %v352_v32, %v1139_v45  ;;  %v87_v19 = vcvt.s32.f32 %v1653_v12  ;;  %v88_v24 = vcvt.s32.f32 %v1659_v16 }
  0x77   :  { %1052 = vmatpush3.bf16.msra.mxu0 %v1051_v30  ;;  %vm597_vm8 = vmand %vm497_vm4, %vm547_vm3  ;;  %vm563_vm4 = vcmp.ge.f32.partialorder %v353_v35, %v1139_v45  ;;  %v1691_v30 = vadd.s32 360, %v1111_v2  ;;  %v223_v31 = vfloor.f32 %v173_v22 }
  0x78   :  { %vm697_vm9 = vmand %vm596_vm6, %vm647_vm5  ;;  %vm663_vm6 = vcmp.lt.f32.partialorder %v352_v32, %v1151_v50  ;;  %v140_v29 = vadd.f32 0.5, %v87_v19  ;;  %v141_v32 = vadd.f32 0.5, %v88_v24 }
  0x79   :  { %vm698_vm10 = vmand %vm597_vm8, %vm648_vm7  ;;  %vm664_vm8 = vcmp.lt.f32.partialorder %v353_v35, %v1151_v50  ;;  %v272_v35 = vmul.f32 20.0, %v222_v27  ;;  %v104_v38 = vcvt.s32.f32 %v1691_v30  ;;  %v273_v40 = vmul.f32 20.0, %v223_v31 }
  0x7a   :  { %vm748_vm14 = vmand %vm697_vm9, %vm723_vm12 }
  0x7b   :  { %vm749_vm1 = vmand %vm698_vm10, %vm723_vm12  ;;  %v798_v41 = vsel %vm748_vm14, 0.045454547, %v1099_v63  ;;  %vm430_vm14 = vcmp.lt.f32.partialorder %v220_v33, %v1137_v43  ;;  %v322_v49 = vsub.f32 %v69_v61, %v272_v35  ;;  %v323_v52 = vsub.f32 %v70_v5, %v273_v40 }
  0x7c   :  { %v799_v46 = vsel %vm749_vm1, 0.045454547, %v1099_v63  ;;  %vm512_vm3 = vmand %vm411_vm11, %vm462_vm13  ;;  %vm379_vm13 = vcmp.ge.f32.partialorder %v220_v33, %v1130_v36  ;;  %vm431_vm1 = vcmp.lt.f32.partialorder %v221_v37, %v1137_v43  ;;  %v103_v33 = vcvt.s32.f32 %v1684_v23 }
  0x7d   :  { %v1053_v48 = vpack.c.bf16 %v799_v46, %v798_v41  ;;  %vm513_vm5 = vmand %vm412_vm15, %vm463_vm0  ;;  %vm380_vm0 = vcmp.ge.f32.partialorder %v221_v37, %v1130_v36  ;;  %v190_v37 = vmul.f32 0.05, %v140_v29  ;;  %v191_v41 = vmul.f32 0.05, %v141_v32 }
  0x7e   :  { %vm612_vm7 = vmand %vm512_vm3, %vm562_vm2  ;;  %vm530_vm3 = vcmp.ge.f32.partialorder %v320_v53, %v1139_v45  ;;  %v156_v46 = vadd.f32 0.5, %v103_v33 }
  0x7f   :  { %1054 = vmatprep.subr.bf16.mxu0 %v1053_v48  ;;  %vm613_vm9 = vmand %vm513_vm5, %vm563_vm4  ;;  %vm531_vm5 = vcmp.ge.f32.partialorder %v321_v56, %v1139_v45  ;;  %v240_v48 = vfloor.f32 %v190_v37 }
  0x80   :  { %vm713_vm10 = vmand %vm612_vm7, %vm663_vm6  ;;  %vm631_vm7 = vcmp.lt.f32.partialorder %v320_v53, %v1151_v50  ;;  %v241_v53 = vfloor.f32 %v191_v41  ;;  %v206_v55 = vmul.f32 0.05, %v156_v46 }
  0x81   :  { %vm714_vm11 = vmand %vm613_vm9, %vm664_vm8  ;;  %vm632_vm9 = vcmp.lt.f32.partialorder %v321_v56, %v1151_v50  ;;  %v71_v56 = vcvt.s32.f32 %v1723_v47  ;;  %v290_v58 = vmul.f32 20.0, %v240_v48 }
  0x82   :  { %vm764_vm15 = vmand %vm713_vm10, %vm723_vm12 }
  0x83   :  { %vm765_vm2 = vmand %vm714_vm11, %vm723_vm12  ;;  %v814_v62 = vsel %vm764_vm15, 0.045454547, %v1099_v63  ;;  %vm448_vm15 = vcmp.lt.f32.partialorder %v238_v51, %v1137_v43  ;;  %v340_v5 = vsub.f32 %v87_v19, %v290_v58 }
  0x84   :  { %v815_v3 = vsel %vm765_vm2, 0.045454547, %v1099_v63  ;;  %vm480_vm4 = vmand %vm379_vm13, %vm430_vm14  ;;  %vm397_vm14 = vcmp.ge.f32.partialorder %v238_v51, %v1130_v36  ;;  %vm449_vm2 = vcmp.lt.f32.partialorder %v239_v54, %v1137_v43  ;;  %v157_v51 = vadd.f32 0.5, %v104_v38 }
  0x85   :  { %v1082_v7 = vpack.c.bf16 %v815_v3, %v814_v62  ;;  %vm481_vm6 = vmand %vm380_vm0, %vm431_vm1  ;;  %vm398_vm1 = vcmp.ge.f32.partialorder %v239_v54, %v1130_v36  ;;  %v1732_v54 = vadd.s32 104, %v1111_v2  ;;  %v291_v62 = vmul.f32 20.0, %v241_v53 }
  0x86   :  { %vm580_vm8 = vmand %vm480_vm4, %vm530_vm3  ;;  %vm548_vm3 = vcmp.ge.f32.partialorder %v338_v8, %v1139_v45  ;;  %v207_v59 = vmul.f32 0.05, %v157_v51  ;;  %v1754_v3 = vadd.s32 240, %v1111_v2 }
  0x87   :  { %1083 = vmatpush1.bf16.msra.mxu1 %v1082_v7  ;;  %vm581_vm10 = vmand %vm481_vm6, %vm531_vm5  ;;  %vm549_vm5 = vcmp.ge.f32.partialorder %v339_v11, %v1139_v45  ;;  %v72_v0 = vcvt.s32.f32 %v1732_v54  ;;  %v256_v7 = vfloor.f32 %v206_v55 }
  0x88   :  { %vm681_vm11 = vmand %vm580_vm8, %vm631_vm7  ;;  %1084 = vmatprep.subr.bf16.mxu1 %v1098_v1  ;;  %vm649_vm8 = vcmp.lt.f32.partialorder %v338_v8, %v1151_v50  ;;  %v124_v8 = vadd.f32 0.5, %v71_v56  ;;  %v89_v12 = vcvt.s32.f32 %v1754_v3 }
  0x89   :  { %vm682_vm13 = vmand %vm581_vm10, %vm632_vm9  ;;  %vm650_vm10 = vcmp.lt.f32.partialorder %v339_v11, %v1151_v50  ;;  %v257_v11 = vfloor.f32 %v207_v59  ;;  %v125_v13 = vadd.f32 0.5, %v72_v0  ;;  %v306_v16 = vmul.f32 20.0, %v256_v7 }
  0x8a   :  { %vm732_vm0 = vmand %vm681_vm11, %vm723_vm12  ;;  %v174_v17 = vmul.f32 0.05, %v124_v8  ;;  %v142_v21 = vadd.f32 0.5, %v89_v12 }
  0x8b   :  { %vm733_vm4 = vmand %vm682_vm13, %vm723_vm12  ;;  %v782_v18 = vsel %vm732_vm0, 0.045454547, %v1099_v63  ;;  %vm464_vm0 = vcmp.lt.f32.partialorder %v254_v10, %v1137_v43  ;;  %v307_v9 = vmul.f32 20.0, %v257_v11  ;;  %v175_v19 = vmul.f32 0.05, %v125_v13 }
  0x8c   :  { %v783_v20 = vsel %vm733_vm4, 0.045454547, %v1099_v63  ;;  %vm498_vm6 = vmand %vm397_vm14, %vm448_vm15  ;;  %vm413_vm15 = vcmp.ge.f32.partialorder %v254_v10, %v1130_v36  ;;  %vm564_vm4 = vcmp.ge.f32.partialorder %v354_v26, %v1139_v45  ;;  %v341_v10 = vsub.f32 %v88_v24, %v291_v62 }
  0x8d   :  { %v1055_v25 = vpack.c.bf16 %v783_v20, %v782_v18  ;;  %vm499_vm7 = vmand %vm398_vm1, %vm449_vm2  ;;  %vm414_vm2 = vcmp.ge.f32.partialorder %v255_v14, %v1130_v36  ;;  %v356_v24 = vsub.f32 %v103_v33, %v306_v16  ;;  %v225_v29 = vfloor.f32 %v175_v19 }
  0x8e   :  { %vm598_vm9 = vmand %vm498_vm6, %vm548_vm3  ;;  %vm465_vm3 = vcmp.lt.f32.partialorder %v255_v14, %v1137_v43  ;;  %v90_v14 = vcvt.s32.f32 %v1757_v4  ;;  %v192_v23 = vmul.f32 0.05, %v142_v21 }
  0x8f   :  { %1056 = vmatpush3.bf16.msra.mxu0 %v1055_v25  ;;  %vm599_vm11 = vmand %vm499_vm7, %vm549_vm5  ;;  %vm565_vm7 = vcmp.ge.f32.partialorder %v355_v28, %v1139_v45  ;;  %v224_v25 = vfloor.f32 %v174_v17  ;;  %v275_v35 = vmul.f32 20.0, %v225_v29 }
  0x90   :  { %vm699_vm13 = vmand %vm598_vm9, %vm649_vm8  ;;  %vm665_vm9 = vcmp.lt.f32.partialorder %v354_v26, %v1151_v50  ;;  %v143_v22 = vadd.f32 0.5, %v90_v14  ;;  %v1793_v26 = vadd.s32 368, %v1111_v2 }
  0x91   :  { %vm700_vm14 = vmand %vm599_vm11, %vm650_vm10  ;;  %vm666_vm11 = vcmp.lt.f32.partialorder %v355_v28, %v1151_v50  ;;  %v1798_v28 = vadd.s32 376, %v1111_v2  ;;  %v274_v32 = vmul.f32 20.0, %v224_v25  ;;  %v325_v46 = vsub.f32 %v72_v0, %v275_v35 }
  0x92   :  { %vm750_vm1 = vmand %vm699_vm13, %vm723_vm12  ;;  %v105_v33 = vcvt.s32.f32 %v1793_v26 }
  0x93   :  { %vm751_vm5 = vmand %vm700_vm14, %vm723_vm12  ;;  %v800_v34 = vsel %vm750_vm1, 0.045454547, %v1099_v63  ;;  %vm832_vm14 = vcmask 130048   ;;  %vm381_vm1 = vcmp.ge.f32.partialorder %v222_v27, %v1130_v36  ;;  %v106_v37 = vcvt.s32.f32 %v1798_v28 }
  0x94   :  { %v801_v39 = vsel %vm751_vm5, 0.045454547, %v1099_v63  ;;  %vm514_vm6 = vmand %vm413_vm15, %vm464_vm0  ;;  %997 = vmatprep.mubr.msk.f32.mxu1 %vm832_vm14, %v827_v44  ;;  %vm433_vm5 = vcmp.lt.f32.partialorder %v223_v31, %v1137_v43  ;;  %v324_v41 = vsub.f32 %v71_v56, %v274_v32  ;;  %v1825_v44 = vadd.s32 112, %v1111_v2 }
  0x95   :  { %v1057_v42 = vpack.c.bf16 %v801_v39, %v800_v34  ;;  %vm515_vm8 = vmand %vm414_vm2, %vm465_vm3  ;;  %vm432_vm2 = vcmp.lt.f32.partialorder %v222_v27, %v1137_v43  ;;  %v357_v27 = vsub.f32 %v104_v38, %v307_v9  ;;  %v242_v39 = vfloor.f32 %v192_v23 }
  0x96   :  { %vm614_vm10 = vmand %vm514_vm6, %vm564_vm4  ;;  %vm382_vm4 = vcmp.ge.f32.partialorder %v223_v31, %v1130_v36  ;;  %v193_v31 = vmul.f32 0.05, %v143_v22  ;;  %v73_v54 = vcvt.s32.f32 %v1825_v44 }
  0x97   :  { %1058 = vmatprep.subr.bf16.mxu0 %v1057_v42  ;;  %vm615_vm13 = vmand %vm515_vm8, %vm565_vm7  ;;  %vm532_vm7 = vcmp.ge.f32.partialorder %v322_v49, %v1139_v45  ;;  %v158_v42 = vadd.f32 0.5, %v105_v33  ;;  %v292_v47 = vmul.f32 20.0, %v242_v39 }
  0x98   :  { %vm715_vm15 = vmand %vm614_vm10, %vm665_vm9  ;;  %vm533_vm9 = vcmp.ge.f32.partialorder %v323_v52, %v1139_v45  ;;  %v1818_v40 = vfloor.f32 %v193_v31  ;;  %v126_v0 = vadd.f32 0.5, %v73_v54 }
  0x99   :  { %vm716_vm0 = vmand %vm615_vm13, %vm666_vm11  ;;  %vm633_vm11 = vcmp.lt.f32.partialorder %v322_v49, %v1151_v50  ;;  %v159_v49 = vadd.f32 0.5, %v106_v37  ;;  %v342_v59 = vsub.f32 %v89_v12, %v292_v47 }
  0x9a   :  { %vm766_vm3 = vmand %vm715_vm15, %vm723_vm12  ;;  %vm634_vm15 = vcmp.lt.f32.partialorder %v323_v52, %v1151_v50  ;;  %v293_v51 = vmul.f32 20.0, %v1818_v40  ;;  %v176_v8 = vmul.f32 0.05, %v126_v0 }
  0x9b   :  { %vm767_vm6 = vmand %vm716_vm0, %vm723_vm12  ;;  %v816_v57 = vsel %vm766_vm3, 0.045454547, %v1099_v63  ;;  %vm399_vm3 = vcmp.ge.f32.partialorder %v240_v48, %v1130_v36  ;;  %v209_v56 = vmul.f32 0.05, %v159_v49  ;;  %v830_v49 = vld [vmem:[%s1983_s0 + $0x30] sm:$0xff] }
  0x9c   :  { %v817_v60 = vsel %vm767_vm6, 0.045454547, %v1099_v63  ;;  %vm482_vm8 = vmand %vm381_vm1, %vm432_vm2  ;;  %vm400_vm6 = vcmp.ge.f32.partialorder %v241_v53, %v1130_v36  ;;  %v226_v17 = vfloor.f32 %v176_v8 }
  0x9d   :  { %v1085_v61 = vpack.c.bf16 %v817_v60, %v816_v57  ;;  %vm483_vm10 = vmand %vm382_vm4, %vm433_vm5  ;;  %vm450_vm4 = vcmp.lt.f32.partialorder %v240_v48, %v1137_v43  ;;  %v1832_v48 = vadd.s32 120, %v1111_v2  ;;  %v343_v60 = vsub.f32 %v90_v14, %v293_v51 }
  0x9e   :  { %vm582_vm13 = vmand %vm482_vm8, %vm532_vm7  ;;  %vm451_vm7 = vcmp.lt.f32.partialorder %v241_v53, %v1137_v43  ;;  %v208_v53 = vmul.f32 0.05, %v158_v42  ;;  %v276_v22 = vmul.f32 20.0, %v226_v17 }
  0x9f   :  { %1086 = vmatpush1.bf16.msra.mxu1 %v1085_v61  ;;  %vm583_vm0 = vmand %vm483_vm10, %vm533_vm9  ;;  %vm550_vm9 = vcmp.ge.f32.partialorder %v340_v5, %v1139_v45  ;;  %v74_v57 = vcvt.s32.f32 %v1832_v48  ;;  %v1860_v61 = vadd.s32 384, %v1111_v2 }
  0xa0   :  { %vm683_vm1 = vmand %vm582_vm13, %vm633_vm11  ;;  %1087 = vmatprep.subr.bf16.mxu1 %v1098_v1  ;;  %vm551_vm11 = vcmp.ge.f32.partialorder %v341_v10, %v1139_v45  ;;  %v258_v62 = vfloor.f32 %v208_v53  ;;  %v326_v28 = vsub.f32 %v73_v54, %v276_v22 }
  0xa1   :  { %vm684_vm2 = vmand %vm583_vm0, %vm634_vm15  ;;  %vm651_vm15 = vcmp.lt.f32.partialorder %v340_v5, %v1151_v50  ;;  %v259_v5 = vfloor.f32 %v209_v56  ;;  %v127_v3 = vadd.f32 0.5, %v74_v57 }
  0xa2   :  { %vm734_vm5 = vmand %vm683_vm1, %vm723_vm12  ;;  %vm652_vm1 = vcmp.lt.f32.partialorder %v341_v10, %v1151_v50  ;;  %v308_v4 = vmul.f32 20.0, %v258_v62  ;;  %v107_v10 = vcvt.s32.f32 %v1860_v61 }
  0xa3   :  { %vm735_vm8 = vmand %vm684_vm2, %vm723_vm12  ;;  %v784_v15 = vsel %vm734_vm5, 0.045454547, %v1099_v63  ;;  %vm415_vm5 = vcmp.ge.f32.partialorder %v256_v7, %v1130_v36  ;;  %v309_v13 = vmul.f32 20.0, %v259_v5  ;;  %v177_v12 = vmul.f32 0.05, %v127_v3 }
  0xa4   :  { %v785_v18 = vsel %vm735_vm8, 0.045454547, %v1099_v63  ;;  %vm500_vm10 = vmand %vm399_vm3, %vm450_vm4  ;;  %vm416_vm8 = vcmp.ge.f32.partialorder %v257_v11, %v1130_v36  ;;  %v358_v16 = vsub.f32 %v105_v33, %v308_v4 }
  0xa5   :  { %v1059_v20 = vpack.c.bf16 %v785_v18, %v784_v15  ;;  %vm501_vm13 = vmand %vm400_vm6, %vm451_vm7  ;;  %vm466_vm6 = vcmp.lt.f32.partialorder %v256_v7, %v1137_v43  ;;  %v1866_v7 = vadd.s32 392, %v1111_v2  ;;  %v160_v18 = vadd.f32 0.5, %v107_v10 }
  0xa6   :  { %vm600_vm0 = vmand %vm500_vm10, %vm550_vm9  ;;  %vm467_vm9 = vcmp.lt.f32.partialorder %v257_v11, %v1137_v43  ;;  %v359_v9 = vsub.f32 %v106_v37, %v309_v13  ;;  %v227_v19 = vfloor.f32 %v177_v12 }
  0xa7   :  { %1060 = vmatpush3.bf16.msra.mxu0 %v1059_v20  ;;  %vm601_vm2 = vmand %vm501_vm13, %vm551_vm11  ;;  %vm566_vm11 = vcmp.ge.f32.partialorder %v356_v24, %v1139_v45  ;;  %v108_v14 = vcvt.s32.f32 %v1866_v7 }
  0xa8   :  { %vm701_vm3 = vmand %vm600_vm0, %vm651_vm15  ;;  %vm567_vm15 = vcmp.ge.f32.partialorder %v357_v27, %v1139_v45  ;;  %v277_v26 = vmul.f32 20.0, %v227_v19 }
  0xa9   :  { %vm702_vm4 = vmand %vm601_vm2, %vm652_vm1  ;;  %vm667_vm1 = vcmp.lt.f32.partialorder %v356_v24, %v1151_v50  ;;  %v161_v20 = vadd.f32 0.5, %v108_v14  ;;  %v210_v24 = vmul.f32 0.05, %v160_v18 }
  0xaa   :  { %vm752_vm7 = vmand %vm701_vm3, %vm723_vm12  ;;  %vm668_vm3 = vcmp.lt.f32.partialorder %v357_v27, %v1151_v50  ;;  %v327_v31 = vsub.f32 %v74_v57, %v277_v26 }
  0xab   :  { %vm753_vm10 = vmand %vm702_vm4, %vm723_vm12  ;;  %v802_v30 = vsel %vm752_vm7, 0.045454547, %v1099_v63  ;;  %vm383_vm7 = vcmp.ge.f32.partialorder %v224_v25, %v1130_v36  ;;  %v211_v27 = vmul.f32 0.05, %v161_v20  ;;  %v260_v23 = vfloor.f32 %v210_v24 }
  0xac   :  { %v803_v34 = vsel %vm753_vm10, 0.045454547, %v1099_v63  ;;  %vm516_vm13 = vmand %vm415_vm5, %vm466_vm6  ;;  %vm384_vm10 = vcmp.ge.f32.partialorder %v225_v29, %v1130_v36 }
  0xad   :  { %v1061_v38 = vpack.c.bf16 %v803_v34, %v802_v30  ;;  %vm517_vm0 = vmand %vm416_vm8, %vm467_vm9  ;;  %vm434_vm8 = vcmp.lt.f32.partialorder %v224_v25, %v1137_v43  ;;  %v261_v30 = vfloor.f32 %v211_v27  ;;  %v310_v33 = vmul.f32 20.0, %v260_v23 }
  0xae   :  { %vm616_vm2 = vmand %vm516_vm13, %vm566_vm11  ;;  %vm435_vm11 = vcmp.lt.f32.partialorder %v225_v29, %v1137_v43 }
  0xaf   :  { %1062 = vmatprep.subr.bf16.mxu0 %v1061_v38  ;;  %vm617_vm4 = vmand %vm517_vm0, %vm567_vm15  ;;  %vm534_vm15 = vcmp.ge.f32.partialorder %v324_v41, %v1139_v45  ;;  %v311_v35 = vmul.f32 20.0, %v261_v30  ;;  %v360_v38 = vsub.f32 %v107_v10, %v310_v33 }
  0xb0   :  { %vm717_vm5 = vmand %vm616_vm2, %vm667_vm1  ;;  %vm535_vm1 = vcmp.ge.f32.partialorder %v325_v46, %v1139_v45 }
  0xb1   :  { %vm718_vm6 = vmand %vm617_vm4, %vm668_vm3  ;;  %vm635_vm3 = vcmp.lt.f32.partialorder %v324_v41, %v1151_v50 }
  0xb2   :  { %vm768_vm9 = vmand %vm717_vm5, %vm723_vm12  ;;  %vm636_vm5 = vcmp.lt.f32.partialorder %v325_v46, %v1151_v50  ;;  %v826_v46 = vld [vmem:[%s1983_s0 + $0x10] sm:$0xff] }
  0xb3   :  { %vm769_vm13 = vmand %vm718_vm6, %vm723_vm12  ;;  %v818_v52 = vsel %vm768_vm9, 0.045454547, %v1099_v63  ;;  %vm401_vm9 = vcmp.ge.f32.partialorder %v242_v39, %v1130_v36 }
  0xb4   :  { %v819_v55 = vsel %vm769_vm13, 0.045454547, %v1099_v63  ;;  %vm484_vm0 = vmand %vm383_vm7, %vm434_vm8  ;;  %vm402_vm13 = vcmp.ge.f32.partialorder %v1818_v40, %v1130_v36 }
  0xb5   :  { %v1088_v58 = vpack.c.bf16 %v819_v55, %v818_v52  ;;  %vm485_vm2 = vmand %vm384_vm10, %vm435_vm11  ;;  %vm452_vm10 = vcmp.lt.f32.partialorder %v242_v39, %v1137_v43  ;;  %v361_v39 = vsub.f32 %v108_v14, %v311_v35 }
  0xb6   :  { %vm584_vm4 = vmand %vm484_vm0, %vm534_vm15  ;;  %vm453_vm15 = vcmp.lt.f32.partialorder %v1818_v40, %v1137_v43  ;;  %vm552_vm0 = vcmp.ge.f32.partialorder %v342_v59, %v1139_v45 }
  0xb7   :  { %1089 = vmatpush1.bf16.msra.mxu1 %v1088_v58  ;;  %vm585_vm6 = vmand %vm485_vm2, %vm535_vm1  ;;  %vm553_vm1 = vcmp.ge.f32.partialorder %v343_v60, %v1139_v45 }
  0xb8   :  { %vm685_vm7 = vmand %vm584_vm4, %vm635_vm3  ;;  %1090 = vmatprep.subr.bf16.mxu1 %v1098_v1 }
  0xb9   :  { %vm686_vm8 = vmand %vm585_vm6, %vm636_vm5  ;;  %vm653_vm5 = vcmp.lt.f32.partialorder %v342_v59, %v1151_v50 }
  0xba   :  { %vm736_vm11 = vmand %vm685_vm7, %vm723_vm12  ;;  %vm654_vm7 = vcmp.lt.f32.partialorder %v343_v60, %v1151_v50 }
  0xbb   :  { %vm737_vm2 = vmand %vm686_vm8, %vm723_vm12  ;;  %v786_v2 = vsel %vm736_vm11, 0.045454547, %v1099_v63  ;;  %vm417_vm11 = vcmp.ge.f32.partialorder %v258_v62, %v1130_v36 }
  0xbc   :  { %v787_v11 = vsel %vm737_vm2, 0.045454547, %v1099_v63  ;;  %vm502_vm3 = vmand %vm401_vm9, %vm452_vm10 }
  0xbd   :  { %v1063_v15 = vpack.c.bf16 %v787_v11, %v786_v2  ;;  %vm503_vm4 = vmand %vm402_vm13, %vm453_vm15  ;;  %vm468_vm13 = vcmp.lt.f32.partialorder %v258_v62, %v1137_v43 }
  0xbe   :  { %vm602_vm6 = vmand %vm502_vm3, %vm552_vm0  ;;  %vm418_vm0 = vcmp.ge.f32.partialorder %v259_v5, %v1130_v36  ;;  %vm568_vm3 = vcmp.ge.f32.partialorder %v358_v16, %v1139_v45 }
  0xbf   :  { %1064 = vmatpush3.bf16.msra.mxu0 %v1063_v15  ;;  %vm603_vm8 = vmand %vm503_vm4, %vm553_vm1  ;;  %vm469_vm1 = vcmp.lt.f32.partialorder %v259_v5, %v1137_v43 }
  0xc0   :  { %vm703_vm9 = vmand %vm602_vm6, %vm653_vm5  ;;  %vm569_vm5 = vcmp.ge.f32.partialorder %v359_v9, %v1139_v45 }
  0xc1   :  { %vm704_vm10 = vmand %vm603_vm8, %vm654_vm7  ;;  %vm669_vm7 = vcmp.lt.f32.partialorder %v358_v16, %v1151_v50 }
  0xc2   :  { %vm754_vm15 = vmand %vm703_vm9, %vm723_vm12  ;;  %vm670_vm9 = vcmp.lt.f32.partialorder %v359_v9, %v1151_v50 }
  0xc3   :  { %vm755_vm2 = vmand %vm704_vm10, %vm723_vm12  ;;  %v804_v21 = vsel %vm754_vm15, 0.045454547, %v1099_v63 }
  0xc4   :  { %v805_v25 = vsel %vm755_vm2, 0.045454547, %v1099_v63  ;;  %vm518_vm4 = vmand %vm417_vm11, %vm468_vm13  ;;  %vm385_vm13 = vcmp.ge.f32.partialorder %v226_v17, %v1130_v36  ;;  %vm386_vm2 = vcmp.ge.f32.partialorder %v227_v19, %v1130_v36 }
  0xc5   :  { %v1065_v29 = vpack.c.bf16 %v805_v25, %v804_v21  ;;  %vm519_vm6 = vmand %vm418_vm0, %vm469_vm1  ;;  %vm436_vm0 = vcmp.lt.f32.partialorder %v226_v17, %v1137_v43 }
  0xc6   :  { %vm618_vm8 = vmand %vm518_vm4, %vm568_vm3  ;;  %vm437_vm3 = vcmp.lt.f32.partialorder %v227_v19, %v1137_v43 }
  0xc7   :  { %1066 = vmatprep.subr.bf16.mxu0 %v1065_v29  ;;  %vm619_vm10 = vmand %vm519_vm6, %vm569_vm5  ;;  %vm536_vm5 = vcmp.ge.f32.partialorder %v326_v28, %v1139_v45 }
  0xc8   :  { %vm719_vm15 = vmand %vm618_vm8, %vm669_vm7  ;;  %vm537_vm7 = vcmp.ge.f32.partialorder %v327_v31, %v1139_v45 }
  0xc9   :  { %vm720_vm11 = vmand %vm619_vm10, %vm670_vm9  ;;  %vm637_vm9 = vcmp.lt.f32.partialorder %v326_v28, %v1151_v50 }
  0xca   :  { %vm770_vm1 = vmand %vm719_vm15, %vm723_vm12  ;;  %vm638_vm15 = vcmp.lt.f32.partialorder %v327_v31, %v1151_v50 }
  0xcb   :  { %vm771_vm4 = vmand %vm720_vm11, %vm723_vm12  ;;  %v820_v32 = vsel %vm770_vm1, 0.045454547, %v1099_v63 }
  0xcc   :  { %v821_v34 = vsel %vm771_vm4, 0.045454547, %v1099_v63  ;;  %vm486_vm6 = vmand %vm385_vm13, %vm436_vm0  ;;  %vm419_vm0 = vcmp.ge.f32.partialorder %v260_v23, %v1130_v36  ;;  %vm420_vm4 = vcmp.ge.f32.partialorder %v261_v30, %v1130_v36  ;;  %v824_v36 = vld [vmem:[%s1983_s0] sm:$0xff] }
  0xcd   :  { %v1091_v37 = vpack.c.bf16 %v821_v34, %v820_v32  ;;  %vm487_vm8 = vmand %vm386_vm2, %vm437_vm3  ;;  %vm470_vm2 = vcmp.lt.f32.partialorder %v260_v23, %v1137_v43 }
  0xce   :  { %vm586_vm10 = vmand %vm486_vm6, %vm536_vm5  ;;  %vm471_vm5 = vcmp.lt.f32.partialorder %v261_v30, %v1137_v43  ;;  %v829_v43 = vld [vmem:[%s1983_s0 + $0x28] sm:$0xff] }
  0xcf   :  { %1092 = vmatpush1.bf16.msra.mxu1 %v1091_v37  ;;  %vm587_vm11 = vmand %vm487_vm8, %vm537_vm7  ;;  %vm570_vm7 = vcmp.ge.f32.partialorder %v360_v38, %v1139_v45 }
  0xd0   :  { %vm687_vm1 = vmand %vm586_vm10, %vm637_vm9  ;;  %1093 = vmatprep.subr.bf16.mxu1 %v1098_v1  ;;  %vm571_vm9 = vcmp.ge.f32.partialorder %v361_v39, %v1139_v45 }
  0xd1   :  { %vm688_vm13 = vmand %vm587_vm11, %vm638_vm15  ;;  %vm671_vm15 = vcmp.lt.f32.partialorder %v360_v38, %v1151_v50 }
  0xd2   :  { %vm738_vm3 = vmand %vm687_vm1, %vm723_vm12  ;;  %vm672_vm1 = vcmp.lt.f32.partialorder %v361_v39, %v1151_v50  ;;  %v828_v50 = vld [vmem:[%s1983_s0 + $0x20] sm:$0xff] }
  0xd3   :  { %vm739_vm6 = vmand %vm688_vm13, %vm723_vm12  ;;  %v788_v1 = vsel %vm738_vm3, 0.045454547, %v1099_v63 }
  0xd4   :  { %v789_v40 = vsel %vm739_vm6, 0.045454547, %v1099_v63  ;;  %vm520_vm8 = vmand %vm419_vm0, %vm470_vm2 }
  0xd5   :  { %v1067_v41 = vpack.c.bf16 %v789_v40, %v788_v1  ;;  %vm521_vm10 = vmand %vm420_vm4, %vm471_vm5 }
  0xd6   :  { %vm620_vm11 = vmand %vm520_vm8, %vm570_vm7 }
  0xd7   :  { %1068 = vmatpush3.bf16.msra.mxu0 %v1067_v41  ;;  %vm621_vm13 = vmand %vm521_vm10, %vm571_vm9 }
  0xd8   :  { %vm721_vm3 = vmand %vm620_vm11, %vm671_vm15 }
  0xd9   :  { %vm722_vm0 = vmand %vm621_vm13, %vm672_vm1 }
  0xda   :  { %904 = vmatmul.mubr.f32.vlgmr.msra.gmra.mrb[0].mxu0 %v824_v36  ;;  %vm772_vm2 = vmand %vm721_vm3, %vm723_vm12 }
  0xdb   :  { %vm773_vm4 = vmand %vm722_vm0, %vm723_vm12  ;;  %v822_v45 = vsel %vm772_vm2, 0.045454547, %v1099_v63  ;;  %908 = vmatprep.mubr.f32.mxu0 %v829_v43 }
  0xdc   :  { %v823_v42 = vsel %vm773_vm4, 0.045454547, %v1099_v63 }
  0xdd   :  { %v1094_v44 = vpack.c.bf16 %v823_v42, %v822_v45 }
  0xde   :  { %909 = vmatmul.mubr.f32.gmra.mrb[2].mxu0 %v828_v50 }
  0xdf   :  { %1095 = vmatpush1.bf16.msra.mxu1 %v1094_v44 }
  0xe2   :  { %979 = vmatmul.mubr.f32.vlgmr.msra.gmra.mrb[0].mxu1 %v826_v46 }
  0xe3   :  { %998 = vmatprep.mubr.msk.f32.mxu1 %vm832_vm14, %v831_v6 }
  0xe6   :  { %984 = vmatmul.mubr.f32.gmra.mrb[2].mxu1 %v830_v49 }
 0x1ad   :  { %v1031_v63 = vpop.f32.mrb[0].mxu0 }
 0x1ae   :  { %v1032_v48 = vpop.f32.mrb[1].mxu0 }
 0x1af   :  { %v1033_v47 = vadd.f32 %v1032_v48, %v1031_v63 }
 0x1b1   :  { %v1034_v51 = vpop.f32.mrb[2].mxu0 }
 0x1b2   :  { %v1035_v52 = vpop.f32.mrb[3].mxu0 }
 0x1b3   :  { %v1036_v53 = vadd.f32 %v1035_v52, %v1034_v51 }
 0x1b5   :  { %v980_v54 = vpop.f32.mrb[0].mxu1 }
 0x1b6   :  { %v981_v55 = vadd.f32 %v1033_v47, %v980_v54  ;;  %v982_v56 = vpop.f32.mrb[1].mxu1 }
 0x1b8   :  { %989 = vst [vmem:[%s1984_s1] sm:$0xff] %v981_v55 }
 0x1b9   :  { %v985_v57 = vpop.f32.mrb[2].mxu1 }
 0x1ba   :  { %v986_v58 = vadd.f32 %v1036_v53, %v985_v57  ;;  %v987_v59 = vpop.f32.mrb[3].mxu1 }
 0x1bc   :  { %990 = vst [vmem:[%s1984_s1 + $0x8] sm:$0xff] %v986_v58 }

</bundles_post_ra>
